<compile_context>
chip_gen: v7x
topology: tpu7x:2x2x1
jax: 0.10.0
libtpu: 0.0.40
codegen_flags: <defaults>
</compile_context>

<pallas_src>
import jax
import jax.numpy as jnp
from jax.experimental import pallas as pl
from jax.experimental.pallas import tpu as pltpu

_SUBLANE = 8  # f32 sublane count


def _round_up(n, m):
    return ((n + m - 1) // m) * m


def _make_mlp_kernel(use_bf16_matmul):
    cast_dt = jnp.bfloat16 if use_bf16_matmul else None

    def _mlp_kernel(x_ref, w1_ref, b1_ref, w2_ref, b2_ref, w3_ref, b3_ref, o_ref):
        def mm(a, w_ref):
            w = w_ref[...]
            if cast_dt is not None:
                a = a.astype(cast_dt)
                w = w.astype(cast_dt)
            return jnp.dot(a, w, preferred_element_type=jnp.float32)

        # layer1 + ReLU (MXU matmul, f32 accumulation; bias/ReLU in f32)
        h1 = jnp.maximum(mm(x_ref[...], w1_ref) + b1_ref[...], 0.0)
        # layer2 + ReLU
        h2 = jnp.maximum(mm(h1, w2_ref) + b2_ref[...], 0.0)
        # layer3 (no activation)
        o_ref[...] = (mm(h2, w3_ref) + b3_ref[...]).astype(o_ref.dtype)

    return _mlp_kernel


def _choose_batch_tile(B, block_m):
    """Pick (tm, n_steps): tm a multiple of 8 (or == B), minimal tail padding,
    and an even step count when the batch is big enough (v7x megacore)."""
    if B <= block_m:
        # One tile unless the batch is big enough that splitting across the two
        # v7x TensorCores is worthwhile (per-step overhead ~0.35 us).
        n_steps = 2 if B >= 1024 else 1
    else:
        n_steps = pl.cdiv(B, block_m)
        if n_steps % 2 == 1:
            n_steps += 1  # even step count for v7x's 2 TCs; harmless elsewhere
    if n_steps == 1:
        tm = B  # full batch dim: legal block dim even if not a multiple of 8
    else:
        tm = _round_up(pl.cdiv(B, n_steps), _SUBLANE)
    n_steps = pl.cdiv(B, tm)  # drop any empty trailing step after rounding
    return tm, n_steps


def outlier_decoder_forward(x, params, *, block_m=4096, use_bf16_matmul=False):
    """x: [B, input_dim] float32. params: dict of w1,b1,w2,b2,w3,b3.

    Weights are [in_features, out_features]; biases are [1, out_features]
    (kernel computes x @ W + b, identical to PyTorch's x @ W.T + b).
    """
    w1, b1 = params["w1"], params["b1"]
    w2, b2 = params["w2"], params["b2"]
    w3, b3 = params["w3"], params["b3"]

    B, input_dim = x.shape
    dim1, dim2, out_dim = w1.shape[1], w2.shape[1], w3.shape[1]

    tm, n_steps = _choose_batch_tile(B, block_m)
    grid = (n_steps,)

    # Weights/biases: full-array blocks, constant index_map -> VMEM-resident.
    def full(a):
        return pl.BlockSpec(a.shape, lambda i: (0, 0))

    # Cost estimate from the true (unpadded) shapes.
    flops = 2 * B * (input_dim * dim1 + dim1 * dim2 + dim2 * out_dim)
    bytes_accessed = 4 * (
        B * input_dim + B * out_dim
        + input_dim * dim1 + dim1
        + dim1 * dim2 + dim2
        + dim2 * out_dim + out_dim
    )

    out = pl.pallas_call(
        _make_mlp_kernel(use_bf16_matmul),
        out_shape=jax.ShapeDtypeStruct((B, out_dim), jnp.float32),
        grid=grid,
        in_specs=[
            pl.BlockSpec((tm, input_dim), lambda i: (i, 0)),  # x: streamed by batch
            full(w1), full(b1),
            full(w2), full(b2),
            full(w3), full(b3),
        ],
        out_specs=pl.BlockSpec((tm, out_dim), lambda i: (i, 0)),
        compiler_params=pltpu.CompilerParams(
            dimension_semantics=("parallel",),  # megacore-shard the batch axis
        ),
        cost_estimate=pl.CostEstimate(
            flops=flops, transcendentals=0, bytes_accessed=bytes_accessed),
    )(x, w1, b1, w2, b2, w3, b3)

    return out


def init_params(key, input_dim, dim1, dim2, output_dim):
    """Deterministic init mimicking nn.Linear's uniform(-1/sqrt(fan_in), ...)."""
    ks = jax.random.split(key, 6)

    def linear(kw, kb, fan_in, fan_out):
        bound = 1.0 / jnp.sqrt(fan_in)
        w = jax.random.uniform(kw, (fan_in, fan_out), jnp.float32, -bound, bound)
        b = jax.random.uniform(kb, (1, fan_out), jnp.float32, -bound, bound)
        return w, b

    w1, b1 = linear(ks[0], ks[1], input_dim, dim1)
    w2, b2 = linear(ks[2], ks[3], dim1, dim2)
    w3, b3 = linear(ks[4], ks[5], dim2, output_dim)
    return {"w1": w1, "b1": b1, "w2": w2, "b2": b2, "w3": w3, "b3": b3}


def _reference(x, p):
    h1 = jnp.maximum(x @ p["w1"] + p["b1"], 0.0)
    h2 = jnp.maximum(h1 @ p["w2"] + p["b2"], 0.0)
    return h2 @ p["w3"] + p["b3"]


if __name__ == "__main__":
    key = jax.random.PRNGKey(0)
    k_x, k_p = jax.random.split(key)

    batch, input_dim, dim1, dim2, output_dim = 8, 32, 64, 48, 16
    x = jax.random.normal(k_x, (batch, input_dim), jnp.float32)
    params = init_params(k_p, input_dim, dim1, dim2, output_dim)

    out = outlier_decoder_forward(x, params)
    out = jax.block_until_ready(out)

    ref = _reference(x, params)
    assert out.shape == (batch, output_dim)
    assert jnp.allclose(out, ref, atol=1e-5, rtol=1e-5), "mismatch vs reference"

    # Larger, non-multiple batch: exercises the multi-step grid and the
    # partially out-of-bounds last block (masked output rows).
    k2 = jax.random.PRNGKey(1)
    x_big = jax.random.normal(k2, (1030, input_dim), jnp.float32)
    out_big = jax.block_until_ready(outlier_decoder_forward(x_big, params))
    ref_big = _reference(x_big, params)
    assert out_big.shape == (1030, output_dim)
    assert jnp.allclose(out_big, ref_big, atol=1e-4, rtol=1e-4), "mismatch (big batch)"

    print("KERNEL_OK")
</pallas_src>

<mosaic_0001>
module attributes {stable_mosaic.version = 11 : i64} {
  func.func @_mlp_kernel(%arg0: i32, %arg1: memref<8x32xf32, #tpu.memory_space<vmem>>, %arg2: memref<32x64xf32, #tpu.memory_space<vmem>>, %arg3: memref<1x64xf32, #tpu.memory_space<vmem>>, %arg4: memref<64x48xf32, #tpu.memory_space<vmem>>, %arg5: memref<1x48xf32, #tpu.memory_space<vmem>>, %arg6: memref<48x16xf32, #tpu.memory_space<vmem>>, %arg7: memref<1x16xf32, #tpu.memory_space<vmem>>, %arg8: memref<8x16xf32, #tpu.memory_space<vmem>>) attributes {dimension_semantics = [#tpu.dimension_semantics<parallel>], iteration_bounds = array<i64: 1>, scalar_prefetch = 0 : i64, scratch_operands = 0 : i64, tpu.core_type = #tpu.core_type<tc>, window_params = [{transform_indices = @transform_0, window_bounds = array<i64: 8, 32>}, {pipeline_mode = #tpu.pipeline_mode<synchronous>, transform_indices = @transform_1, window_bounds = array<i64: 32, 64>}, {pipeline_mode = #tpu.pipeline_mode<synchronous>, transform_indices = @transform_2, window_bounds = array<i64: 1, 64>}, {pipeline_mode = #tpu.pipeline_mode<synchronous>, transform_indices = @transform_3, window_bounds = array<i64: 64, 48>}, {pipeline_mode = #tpu.pipeline_mode<synchronous>, transform_indices = @transform_4, window_bounds = array<i64: 1, 48>}, {pipeline_mode = #tpu.pipeline_mode<synchronous>, transform_indices = @transform_5, window_bounds = array<i64: 48, 16>}, {pipeline_mode = #tpu.pipeline_mode<synchronous>, transform_indices = @transform_6, window_bounds = array<i64: 1, 16>}, {transform_indices = @transform_7, window_bounds = array<i64: 8, 16>}]} {
    %c0 = arith.constant 0 : index
    %c0_0 = arith.constant 0 : index
    %0 = vector.load %arg1[%c0, %c0_0] : memref<8x32xf32, #tpu.memory_space<vmem>>, vector<8x32xf32>
    %c0_1 = arith.constant 0 : index
    %c0_2 = arith.constant 0 : index
    %1 = vector.load %arg2[%c0_1, %c0_2] : memref<32x64xf32, #tpu.memory_space<vmem>>, vector<32x64xf32>
    %cst = arith.constant dense<0.000000e+00> : vector<8x64xf32>
    %2 = tpu.matmul %0, %1, %cst {dimension_numbers = #tpu.dot_dimension_numbers<[1], [0], [0], [1], [0, 0, 1, 1], [], []>} : vector<8x32xf32>, vector<32x64xf32>, vector<8x64xf32> -> vector<8x64xf32>
    %c0_3 = arith.constant 0 : index
    %c0_4 = arith.constant 0 : index
    %3 = vector.load %arg3[%c0_3, %c0_4] : memref<1x64xf32, #tpu.memory_space<vmem>>, vector<1x64xf32>
    %4 = vector.broadcast %3 : vector<1x64xf32> to vector<8x64xf32>
    %5 = arith.addf %2, %4 : vector<8x64xf32>
    %cst_5 = arith.constant 0.000000e+00 : f32
    %6 = vector.broadcast %cst_5 : f32 to vector<8x64xf32>
    %7 = arith.maximumf %5, %6 : vector<8x64xf32>
    %c0_6 = arith.constant 0 : index
    %c0_7 = arith.constant 0 : index
    %8 = vector.load %arg4[%c0_6, %c0_7] : memref<64x48xf32, #tpu.memory_space<vmem>>, vector<64x48xf32>
    %cst_8 = arith.constant dense<0.000000e+00> : vector<8x48xf32>
    %9 = tpu.matmul %7, %8, %cst_8 {dimension_numbers = #tpu.dot_dimension_numbers<[1], [0], [0], [1], [0, 0, 1, 1], [], []>} : vector<8x64xf32>, vector<64x48xf32>, vector<8x48xf32> -> vector<8x48xf32>
    %c0_9 = arith.constant 0 : index
    %c0_10 = arith.constant 0 : index
    %10 = vector.load %arg5[%c0_9, %c0_10] : memref<1x48xf32, #tpu.memory_space<vmem>>, vector<1x48xf32>
    %11 = vector.broadcast %10 : vector<1x48xf32> to vector<8x48xf32>
    %12 = arith.addf %9, %11 : vector<8x48xf32>
    %cst_11 = arith.constant 0.000000e+00 : f32
    %13 = vector.broadcast %cst_11 : f32 to vector<8x48xf32>
    %14 = arith.maximumf %12, %13 : vector<8x48xf32>
    %c0_12 = arith.constant 0 : index
    %c0_13 = arith.constant 0 : index
    %15 = vector.load %arg6[%c0_12, %c0_13] : memref<48x16xf32, #tpu.memory_space<vmem>>, vector<48x16xf32>
    %cst_14 = arith.constant dense<0.000000e+00> : vector<8x16xf32>
    %16 = tpu.matmul %14, %15, %cst_14 {dimension_numbers = #tpu.dot_dimension_numbers<[1], [0], [0], [1], [0, 0, 1, 1], [], []>} : vector<8x48xf32>, vector<48x16xf32>, vector<8x16xf32> -> vector<8x16xf32>
    %c0_15 = arith.constant 0 : index
    %c0_16 = arith.constant 0 : index
    %17 = vector.load %arg7[%c0_15, %c0_16] : memref<1x16xf32, #tpu.memory_space<vmem>>, vector<1x16xf32>
    %18 = vector.broadcast %17 : vector<1x16xf32> to vector<8x16xf32>
    %19 = arith.addf %16, %18 : vector<8x16xf32>
    %c0_17 = arith.constant 0 : index
    %c0_18 = arith.constant 0 : index
    %20 = vector.load %arg8[%c0_17, %c0_18] : memref<8x16xf32, #tpu.memory_space<vmem>>, vector<8x16xf32>
    tpu.vector_store %arg8[%c0_17, %c0_18], %19 {strides = array<i32>} : memref<8x16xf32, #tpu.memory_space<vmem>>, vector<8x16xf32>,
    return
  }
  func.func @transform_0(%arg0: i32) -> (i32, i32) {
    %c0_i32 = arith.constant 0 : i32
    %c0_i32_0 = arith.constant 0 : i32
    return %arg0, %c0_i32 : i32, i32
  }
  func.func @transform_1(%arg0: i32) -> (i32, i32) {
    %c0_i32 = arith.constant 0 : i32
    %c0_i32_0 = arith.constant 0 : i32
    %c0_i32_1 = arith.constant 0 : i32
    return %c0_i32, %c0_i32_0 : i32, i32
  }
  func.func @transform_2(%arg0: i32) -> (i32, i32) {
    %c0_i32 = arith.constant 0 : i32
    %c0_i32_0 = arith.constant 0 : i32
    %c0_i32_1 = arith.constant 0 : i32
    return %c0_i32, %c0_i32_0 : i32, i32
  }
  func.func @transform_3(%arg0: i32) -> (i32, i32) {
    %c0_i32 = arith.constant 0 : i32
    %c0_i32_0 = arith.constant 0 : i32
    %c0_i32_1 = arith.constant 0 : i32
    return %c0_i32, %c0_i32_0 : i32, i32
  }
  func.func @transform_4(%arg0: i32) -> (i32, i32) {
    %c0_i32 = arith.constant 0 : i32
    %c0_i32_0 = arith.constant 0 : i32
    %c0_i32_1 = arith.constant 0 : i32
    return %c0_i32, %c0_i32_0 : i32, i32
  }
  func.func @transform_5(%arg0: i32) -> (i32, i32) {
    %c0_i32 = arith.constant 0 : i32
    %c0_i32_0 = arith.constant 0 : i32
    %c0_i32_1 = arith.constant 0 : i32
    return %c0_i32, %c0_i32_0 : i32, i32
  }
  func.func @transform_6(%arg0: i32) -> (i32, i32) {
    %c0_i32 = arith.constant 0 : i32
    %c0_i32_0 = arith.constant 0 : i32
    %c0_i32_1 = arith.constant 0 : i32
    return %c0_i32, %c0_i32_0 : i32, i32
  }
  func.func @transform_7(%arg0: i32) -> (i32, i32) {
    %c0_i32 = arith.constant 0 : i32
    %c0_i32_0 = arith.constant 0 : i32
    return %arg0, %c0_i32 : i32, i32
  }
}

</mosaic_0001>

<bundles_post_ra>
// kernel: tpu_custom_call.1
= control target key start
LH: loop header
LB: loop body
LE: loop exit
PB: predicated region body
PF: predicated region fallthrough
CT: control target
= control target key end

     0   :  { %v434_v3 = vmov 0.0|0.0   ;;  %vm435_vm0 = vmmov 0   ;;  %v436_v6 = vmov 0.0   ;;  %s559_s0 = inlined_call_operand.vmem [shape: f32[8,32], index: 0, kind: input, shape index: {}]   ;;  %s560_s1 = inlined_call_operand.vmem [shape: f32[32,64], index: 1, kind: input, shape index: {}]   ;;  %s561_s2 = inlined_call_operand.vmem [shape: f32[1,64], index: 2, kind: input, shape index: {}]   ;;  %s562_s3 = inlined_call_operand.vmem [shape: f32[64,48], index: 3, kind: input, shape index: {}]   ;;  %s563_s4 = inlined_call_operand.vmem [shape: f32[1,48], index: 4, kind: input, shape index: {}]   ;;  %s564_s5 = inlined_call_operand.vmem [shape: f32[48,16], index: 5, kind: input, shape index: {}]   ;;  %s565_s6 = inlined_call_operand.vmem [shape: f32[1,16], index: 6, kind: input, shape index: {}]   ;;  %s566_s7 = inlined_call_operand.hbm [shape: f32[8,16], index: 7, kind: output, shape index: {}]  }
   0x1   :  { %v28_v0 = vld [vmem:[%s560_s1] sm:$0xff]  ;;  %v29_v1 = vld [vmem:[%s560_s1 + $0x8] sm:$0xff]  ;;  %v30_v2 = vld [vmem:[%s560_s1 + $0x10] sm:$0xff]  ;;  %379 = vmatprep.subr.bf16.mxu0 %v434_v3  ;;  %342 = vmatprep.mubr.msk.f32.mxu0 %vm435_vm0, %v436_v6 }
   0x2   :  { %v380_v4 = vpack.c.bf16 %v29_v1, %v28_v0  ;;  %v31_v5 = vld [vmem:[%s560_s1 + $0x18] sm:$0xff]  ;;  %v114_v7 = vld [vmem:[%s562_s3] sm:$0xff]  ;;  %385 = vmatprep.subr.bf16.mxu1 %v434_v3  ;;  %v115_v8 = vld [vmem:[%s562_s3 + $0x8] sm:$0xff]  ;;  %361 = vmatprep.mubr.msk.f32.mxu1 %vm435_vm0, %v436_v6 }
   0x3   :  { %v116_v9 = vld [vmem:[%s562_s3 + $0x10] sm:$0xff]  ;;  %v117_v10 = vld [vmem:[%s562_s3 + $0x18] sm:$0xff]  ;;  %v383_v11 = vpack.c.bf16 %v31_v5, %v30_v2  ;;  %v386_v12 = vpack.c.bf16 %v115_v8, %v114_v7 }
   0x4   :  { %381 = vmatpush3.bf16.msra.mxu0 %v380_v4 }
   0x5   :  { %382 = vmatprep.subr.bf16.mxu0 %v434_v3 }
   0x6   :  { %12 = vsyncpa [#allocation3], 0  ;;  %387 = vmatpush3.bf16.msra.mxu1 %v386_v12  ;;  %v389_v13 = vpack.c.bf16 %v117_v10, %v116_v9  ;;  %v118_v14 = vld [vmem:[%s562_s3 + $0x20] sm:$0xff]  ;;  %v119_v15 = vld [vmem:[%s562_s3 + $0x28] sm:$0xff]  ;;  %vm39_vm1 = vcmask 261120   ;;  %vm129_vm2 = vcmask 523264  }
   0x7   :  { %388 = vmatprep.subr.bf16.mxu1 %v434_v3  ;;  %v27_v16 = vld [vmem:[%s559_s0] sm:$0xff]  ;;  %v392_v17 = vpack.c.bf16 %v119_v15, %v118_v14  ;;  %v120_v18 = vld [vmem:[%s562_s3 + $0x30] sm:$0xff]  ;;  %v121_v19 = vld [vmem:[%s562_s3 + $0x38] sm:$0xff]  ;;  %vm217_vm3 = vcmask 392192   ;;  %s437_s17 = smov [#allocation2]   ;;  %vm291_vm4 = vcmask 130048  }
   0x8   :  { %384 = vmatpush3.bf16.msra.mxu0 %v383_v11  ;;  %v395_v20 = vpack.c.bf16 %v121_v19, %v120_v18  ;;  %v204_v21 = vld [vmem:[%s564_s5] sm:$0xff]  ;;  %v205_v22 = vld [vmem:[%s564_s5 + $0x8] sm:$0xff]  ;;  %v206_v23 = vld [vmem:[%s564_s5 + $0x10] sm:$0xff]  ;;  %s299_s18 = sshll.u32 %s437_s17, 4  ;;  %s300_s18 = int_to_ptr.vmem [resolvable:$true] %s299_s18 }
   0x9   :  { %397 = vmatprep.subr.bf16.mxu0 %v434_v3  ;;  %v398_v24 = vpack.c.bf16 %v205_v22, %v204_v21  ;;  %v207_v25 = vld [vmem:[%s564_s5 + $0x18] sm:$0xff]  ;;  %v307_v27 = vld [vmem:[%s561_s2] ss:$0 sm:$0xff]  ;;  %v209_v33 = vld [vmem:[%s564_s5 + $0x28] sm:$0xff]  ;;  %p415_p1 = scmp.lt.s32.totalorder %s300_s18, %s300_s18 }
   0xa   :  { %390 = vmatpush3.bf16.msra.mxu1 %v389_v13  ;;  %v401_v26 = vpack.c.bf16 %v207_v25, %v206_v23  ;;  %v208_v32 = vld [vmem:[%s564_s5 + $0x20] sm:$0xff]  ;;  %s410_s5 = scalar_lea.vmem %s300_s18, 128 }
   0xb   :  { %343 = vmatmul.mubr.msk.f32.vlgmr.msra.gmra.mrb[0].mxu0 %vm39_vm1, %v27_v16  ;;  %391 = vmatprep.subr.bf16.mxu1 %v434_v3  ;;  %v404_v34 = vpack.c.bf16 %v209_v33, %v208_v32  ;;  %v309_v35 = vld [vmem:[%s563_s4] ss:$0 sm:$0xff]  ;;  %p411_p0 = scmp.ne.s32.totalorder %s300_s18, %s410_s5  ;;  %p416_p2 = scmp.lt.s32.totalorder %s410_s5, %s410_s5 }
   0xc   :  { %376 = vmatprep.mubr.msk.f32.mxu0 %vm435_vm0, %v436_v6  ;;  %399 = vmatpush3.bf16.msra.mxu0 %v398_v24  ;;  %v311_v40 = vld [vmem:[%s565_s6] ss:$0 sm:$0xff] }
   0xd   :  { %400 = vmatprep.subr.bf16.mxu0 %v434_v3  ;;  %p417_p3 = por %p416_p2, %p415_p1 }
   0xe   :  { %393 = vmatpush3.bf16.msra.mxu1 %v392_v17 }
   0xf   :  { %394 = vmatprep.subr.bf16.mxu1 %v434_v3  ;;  %p418_p4 = pnand %p417_p3, %p411_p0 }
  0x10   :  { %402 = vmatpush3.bf16.msra.mxu0 %v401_v26 }
  0x11   :  { %403 = vmatprep.subr.bf16.mxu0 %v434_v3 }
  0x12   :  { %396 = vmatpush3.bf16.msra.mxu1 %v395_v20 }
  0x14   :  { %405 = vmatpush3.bf16.msra.mxu0 %v404_v34 }
  0xde   :  { %v109_v28 = vpop.f32.mrb[0].mxu0 }
  0xdf   :  { %v110_v29 = vadd.f32 %v307_v27, %v109_v28  ;;  %v344_v30 = vpop.f32.mrb[1].mxu0 }
  0xe1   :  { %v113_v31 = vmax.f32 %v110_v29, 0.0 }
  0xe3   :  { %362 = vmatmul.mubr.msk.f32.vlgmr.msra.gmra.mrb[0].mxu1 %vm129_vm2, %v113_v31 }
 0x1b6   :  { %v199_v36 = vpop.f32.mrb[0].mxu1 }
 0x1b7   :  { %v200_v37 = vadd.f32 %v309_v35, %v199_v36  ;;  %v363_v38 = vpop.f32.mrb[1].mxu1 }
 0x1b9   :  { %v203_v39 = vmax.f32 %v200_v37, 0.0 }
 0x1bb   :  { %377 = vmatmul.mubr.msk.f32.vlgmr.msra.gmra.mrb[2].mxu0 %vm217_vm3, %v203_v39 }
 0x28e   :  { %v287_v41 = vpop.f32.mrb[2].mxu0 }
 0x28f   :  { %v288_v42 = vadd.f32 %v311_v40, %v287_v41  ;;  %v378_v43 = vpop.f32.mrb[3].mxu0 }
 0x291   :  { %292 = vst.msk [vmem:[#allocation2] sm:$0xff] %vm291_vm4, %v288_v42 }
 0x292   :  { %421 = shalt.err (!%p418_p4)
}
 0x293   :  { %s422_s20 = scalar_lea.hbm %s566_s7, 128 }
 0x294   :  { %p423_p5 = scmp.ne.s32.totalorder %s566_s7, %s422_s20  ;;  %p426_p6 = scmp.lt.u32.totalorder %s422_s20, %s566_s7 }
 0x296   :  { %p428_p7 = pnand %p426_p6, %p423_p5 }
 0x298   :  { %431 = shalt.err (!%p428_p7)
}
 0x299   :  { %302 = dma.vmem_to_hbm [thread:$0]  %s300_s18, 128, %s566_s7, [#allocation3]  }
 0x29a   :  { %432 = dma.done.wait [#allocation3], 128  }
 0x29b   :  { %433 = vsyncadd [#allocation3], 4294967168 }
 0x29c   :  { %306 = vsyncpa [#allocation3], 1 }

</bundles_post_ra>
